<compile_context>
chip_gen: v7x
topology: tpu7x:2x2x1
jax: 0.10.0
libtpu: 0.0.40
codegen_flags: <defaults>
</compile_context>

<pallas_src>
import jax
import jax.numpy as jnp
from jax.experimental import pallas as pl
from jax.experimental.pallas import tpu as pltpu

_MXU_MIN_C = 64  # route the channel mix through the MXU only for wide nf


def _pa_kernel(x_ref, w_ref, b_ref, o_ref):
    # x_ref: (C, TP)   w_ref: (C, C) [w[o, c]]   b_ref: (C, 1)   o_ref: (C, TP)
    C = x_ref.shape[0]
    xf = x_ref[...].astype(jnp.float32)
    w = w_ref[...]
    b = b_ref[...]
    if C >= _MXU_MIN_C:
        # Wide channel count: worth the MXU.
        y = jnp.dot(w, xf, preferred_element_type=jnp.float32) + b
    else:
        # VPU path: y[o, p] = b[o] + sum_c w[o, c] * x[c, p]
        # C broadcast-multiply-adds over full (C, TP) vregs; keeps the MXU out
        # of a tiny padded (nf, nf) contraction.
        y = b  # (C, 1), broadcasts over lanes
        for c in range(C):
            y = y + w[:, c:c + 1] * xf[c:c + 1, :]
    o_ref[...] = (xf * jax.nn.sigmoid(y)).astype(o_ref.dtype)


def _choose_pixel_tile(hw, c, itemsize, target_block_bytes=2 << 20):
    """Pick a lane-dense pixel tile (multiple of 128) bounded by a VMEM budget.

    ~2 MiB per block keeps (input + output) x double-buffering under ~8 MiB,
    comfortably inside even v5e's 16 MiB default scoped VMEM (and far under
    v7x's 32 MiB default / 64 MiB physical).
    """
    if hw <= 128:
        return int(hw)  # full-extent last dim is always a legal block
    cap = max(128, (target_block_bytes // max(1, c * itemsize)) // 128 * 128)
    return int(min(hw, cap))


def pa_forward(x_nchw, weight, bias):
    """Pixel attention forward.

    x_nchw : (N, C, H, W)  (any float dtype; I/O stays in that dtype,
             the conv/sigmoid math runs in f32 inside the kernel)
    weight : (C_out, C_in) from the 1x1 conv (PyTorch weight[:, :, 0, 0])
    bias   : (C_out,)
    """
    N, C, H, W = x_nchw.shape
    HW = H * W
    x3 = x_nchw.reshape(N, C, HW)  # free reshape of NCHW, no transpose

    w_mat = jnp.asarray(weight, jnp.float32)               # (C, C), w[o, c]
    b_mat = jnp.asarray(bias, jnp.float32).reshape(C, 1)   # (C, 1)

    tile_p = _choose_pixel_tile(HW, C, x3.dtype.itemsize)
    n_ptiles = pl.cdiv(HW, tile_p)  # tail tile (if any) is masked automatically

    out3 = pl.pallas_call(
        _pa_kernel,
        out_shape=jax.ShapeDtypeStruct((N, C, HW), x3.dtype),
        grid_spec=pltpu.PrefetchScalarGridSpec(
            num_scalar_prefetch=0,
            grid=(N, n_ptiles),
            in_specs=[
                # Batch dim squeezed out; channels on sublanes, pixels on lanes.
                pl.BlockSpec((None, C, tile_p), lambda n, p: (n, 0, p)),
                pl.BlockSpec((C, C), lambda n, p: (0, 0)),
                pl.BlockSpec((C, 1), lambda n, p: (0, 0)),
            ],
            out_specs=pl.BlockSpec((None, C, tile_p), lambda n, p: (n, 0, p)),
        ),
        compiler_params=pltpu.CompilerParams(
            dimension_semantics=("parallel", "parallel")),
    )(x3, w_mat, b_mat)

    return out3.reshape(N, C, H, W)


def pa_reference(x_nchw, weight, bias):
    """Pure-JAX reference matching the PyTorch module."""
    y = jnp.einsum("oc,nchw->nohw", weight, x_nchw) + bias[None, :, None, None]
    y = jax.nn.sigmoid(y)
    return x_nchw * y


if __name__ == "__main__":
    key = jax.random.PRNGKey(0)
    k_x, k_w, k_b = jax.random.split(key, 3)

    N, C, H, W = 2, 4, 16, 16  # nf = 4
    x = jax.random.normal(k_x, (N, C, H, W), dtype=jnp.float32)

    # Deterministic "conv" parameters (synthetic init, no checkpoint).
    weight = jax.random.normal(k_w, (C, C), dtype=jnp.float32) * 0.1
    bias = jax.random.normal(k_b, (C,), dtype=jnp.float32) * 0.1

    out = jax.block_until_ready(pa_forward(x, weight, bias))
    ref = pa_reference(x, weight, bias)

    assert out.shape == (N, C, H, W)
    assert jnp.allclose(out, ref, atol=1e-5, rtol=1e-5), "mismatch vs reference"

    print("KERNEL_OK")
</pallas_src>

<mosaic_0001>
module attributes {stable_mosaic.version = 11 : i64} {
  func.func @_pa_kernel(%arg0: i32, %arg1: i32, %arg2: memref<1x4x256xf32, #tpu.memory_space<vmem>>, %arg3: memref<4x4xf32, #tpu.memory_space<vmem>>, %arg4: memref<4x1xf32, #tpu.memory_space<vmem>>, %arg5: memref<1x4x256xf32, #tpu.memory_space<vmem>>) attributes {dimension_semantics = [#tpu.dimension_semantics<parallel>, #tpu.dimension_semantics<parallel>], iteration_bounds = array<i64: 2, 1>, scalar_prefetch = 0 : i64, scratch_operands = 0 : i64, tpu.core_type = #tpu.core_type<tc>, window_params = [{transform_indices = @transform_0, window_bounds = array<i64: 1, 4, 256>}, {pipeline_mode = #tpu.pipeline_mode<synchronous>, transform_indices = @transform_1, window_bounds = array<i64: 4, 4>}, {pipeline_mode = #tpu.pipeline_mode<synchronous>, transform_indices = @transform_2, window_bounds = array<i64: 4, 1>}, {transform_indices = @transform_3, window_bounds = array<i64: 1, 4, 256>}]} {
    %c0 = arith.constant 0 : index
    %c0_0 = arith.constant 0 : index
    %c0_1 = arith.constant 0 : index
    %0 = vector.load %arg2[%c0, %c0_0, %c0_1] : memref<1x4x256xf32, #tpu.memory_space<vmem>>, vector<1x4x256xf32>
    %1 = vector.shape_cast %0 : vector<1x4x256xf32> to vector<4x256xf32>
    %c0_2 = arith.constant 0 : index
    %c0_3 = arith.constant 0 : index
    %2 = vector.load %arg3[%c0_2, %c0_3] : memref<4x4xf32, #tpu.memory_space<vmem>>, vector<4x4xf32>
    %c0_4 = arith.constant 0 : index
    %c0_5 = arith.constant 0 : index
    %3 = vector.load %arg4[%c0_4, %c0_5] : memref<4x1xf32, #tpu.memory_space<vmem>>, vector<4x1xf32>
    %4 = vector.extract_strided_slice %2 {offsets = [0, 0], sizes = [4, 1], strides = [1, 1]} : vector<4x4xf32> to vector<4x1xf32>
    %5 = vector.extract_strided_slice %1 {offsets = [0, 0], sizes = [1, 256], strides = [1, 1]} : vector<4x256xf32> to vector<1x256xf32>
    %6 = vector.broadcast %4 : vector<4x1xf32> to vector<4x256xf32>
    %7 = vector.broadcast %5 : vector<1x256xf32> to vector<4x256xf32>
    %8 = arith.mulf %6, %7 : vector<4x256xf32>
    %9 = vector.broadcast %3 : vector<4x1xf32> to vector<4x256xf32>
    %10 = arith.addf %9, %8 : vector<4x256xf32>
    %11 = vector.extract_strided_slice %2 {offsets = [0, 1], sizes = [4, 1], strides = [1, 1]} : vector<4x4xf32> to vector<4x1xf32>
    %12 = vector.extract_strided_slice %1 {offsets = [1, 0], sizes = [1, 256], strides = [1, 1]} : vector<4x256xf32> to vector<1x256xf32>
    %13 = vector.broadcast %11 : vector<4x1xf32> to vector<4x256xf32>
    %14 = vector.broadcast %12 : vector<1x256xf32> to vector<4x256xf32>
    %15 = arith.mulf %13, %14 : vector<4x256xf32>
    %16 = arith.addf %10, %15 : vector<4x256xf32>
    %17 = vector.extract_strided_slice %2 {offsets = [0, 2], sizes = [4, 1], strides = [1, 1]} : vector<4x4xf32> to vector<4x1xf32>
    %18 = vector.extract_strided_slice %1 {offsets = [2, 0], sizes = [1, 256], strides = [1, 1]} : vector<4x256xf32> to vector<1x256xf32>
    %19 = vector.broadcast %17 : vector<4x1xf32> to vector<4x256xf32>
    %20 = vector.broadcast %18 : vector<1x256xf32> to vector<4x256xf32>
    %21 = arith.mulf %19, %20 : vector<4x256xf32>
    %22 = arith.addf %16, %21 : vector<4x256xf32>
    %23 = vector.extract_strided_slice %2 {offsets = [0, 3], sizes = [4, 1], strides = [1, 1]} : vector<4x4xf32> to vector<4x1xf32>
    %24 = vector.extract_strided_slice %1 {offsets = [3, 0], sizes = [1, 256], strides = [1, 1]} : vector<4x256xf32> to vector<1x256xf32>
    %25 = vector.broadcast %23 : vector<4x1xf32> to vector<4x256xf32>
    %26 = vector.broadcast %24 : vector<1x256xf32> to vector<4x256xf32>
    %27 = arith.mulf %25, %26 : vector<4x256xf32>
    %28 = arith.addf %22, %27 : vector<4x256xf32>
    %29 = arith.negf %28 : vector<4x256xf32>
    %30 = math.exp %29 : vector<4x256xf32>
    %cst = arith.constant 1.000000e+00 : f32
    %31 = vector.broadcast %cst : f32 to vector<4x256xf32>
    %32 = arith.addf %31, %30 : vector<4x256xf32>
    %33 = arith.divf %31, %32 : vector<4x256xf32>
    %34 = arith.mulf %1, %33 : vector<4x256xf32>
    %c0_6 = arith.constant 0 : index
    %c0_7 = arith.constant 0 : index
    %c0_8 = arith.constant 0 : index
    %35 = vector.load %arg5[%c0_6, %c0_7, %c0_8] : memref<1x4x256xf32, #tpu.memory_space<vmem>>, vector<1x4x256xf32>
    %36 = vector.shape_cast %35 : vector<1x4x256xf32> to vector<4x256xf32>
    %37 = vector.shape_cast %34 : vector<4x256xf32> to vector<1x4x256xf32>
    tpu.vector_store %arg5[%c0_6, %c0_7, %c0_8], %37 {strides = array<i32>} : memref<1x4x256xf32, #tpu.memory_space<vmem>>, vector<1x4x256xf32>,
    return
  }
  func.func @transform_0(%arg0: i32, %arg1: i32) -> (i32, i32, i32) {
    %c0_i32 = arith.constant 0 : i32
    %c0_i32_0 = arith.constant 0 : i32
    return %arg0, %c0_i32, %arg1 : i32, i32, i32
  }
  func.func @transform_1(%arg0: i32, %arg1: i32) -> (i32, i32) {
    %c0_i32 = arith.constant 0 : i32
    %c0_i32_0 = arith.constant 0 : i32
    %c0_i32_1 = arith.constant 0 : i32
    return %c0_i32, %c0_i32_0 : i32, i32
  }
  func.func @transform_2(%arg0: i32, %arg1: i32) -> (i32, i32) {
    %c0_i32 = arith.constant 0 : i32
    %c0_i32_0 = arith.constant 0 : i32
    %c0_i32_1 = arith.constant 0 : i32
    return %c0_i32, %c0_i32_0 : i32, i32
  }
  func.func @transform_3(%arg0: i32, %arg1: i32) -> (i32, i32, i32) {
    %c0_i32 = arith.constant 0 : i32
    %c0_i32_0 = arith.constant 0 : i32
    return %arg0, %c0_i32, %arg1 : i32, i32, i32
  }
}

</mosaic_0001>

<bundles_post_ra>
// kernel: tpu_custom_call.1
= control target key start
LH: loop header
LB: loop body
LE: loop exit
PB: predicated region body
PF: predicated region fallthrough
CT: control target
= control target key end

     0   :  { %8 = vsyncpa [#allocation3], 0  ;;  %s859_s0 = inlined_call_operand.hbm [shape: f32[2,4,256], index: 0, kind: input, shape index: {}]   ;;  %s860_s1 = inlined_call_operand.vmem [shape: f32[4,4], index: 1, kind: input, shape index: {}]   ;;  %s861_s2 = inlined_call_operand.vmem [shape: f32[4,1], index: 2, kind: input, shape index: {}]   ;;  %s862_s3 = inlined_call_operand.hbm [shape: f32[2,4,256], index: 3, kind: output, shape index: {}]  }
   0x1   :  { %10 = vsyncpa [#allocation3 + $0x1], 0 }
   0x2   :  { %11 = vsyncpa [#allocation4], 0 }
   0x3   :  { %13 = vsyncpa [#allocation4 + $0x1], 0  ;;  %s677_s12 = smov 0   ;;  %s679_s13 = smov 0  }
   0x4   :  { %s681_s14 = smov 0   ;;  %s683_s15 = smov 0  }
   0x5   :  { %s685_s16 = smov 0   ;;  %s687_s17 = smov 0  }
   0x6 LB: > { %s440_s18 = sadd.s32 4294967295, %s649_s17   ;;  %s441_s19 = sadd.s32 4294967294, %s649_s17   ;;  %s649_s17 = sphi %s687_s17, %s19_s17   ;;  %s645_s16 = sphi %s685_s16, %s878_s16   ;;  %s641_s15 = sphi %s683_s15, %s877_s15   ;;  %s637_s14 = sphi %s681_s14, %s876_s14   ;;  %s633_s13 = sphi %s679_s13, %s875_s13   ;;  %s629_s12 = sphi %s677_s12, %s874_s12  }
   0x7   : > { %s31_s20 = sadd.s32 1, %s645_s16  ;;  %s40_s21 = sadd.s32 1, %s637_s14 }
   0x8   : > { %p33_p0 = scmp.ge.s32.totalorder %s31_s20, 2  ;;  %p47_p1 = scmp.ne.s32.totalorder %s637_s14, %s633_s13 }
   0x9   : > { %p48_p2 = scmp.eq.s32.totalorder %s649_s17, 0  ;;  %p53_p3 = scmp.ne.s32.totalorder %s633_s13, %s629_s12 }
   0xa   : > { %s880_s20 = smov (%p33_p0, %s31_s20), 0  ;;  %p54_p5 = scmp.eq.s32.totalorder %s440_s18, 0 }
   0xb   : > { %p718_p4 = por %p48_p2, %p47_p1  ;;  %s35_s23 = ssub.s32 %s645_s16, %s880_s20 }
   0xc   : > { %p121_p6 = scmp.eq.s32.totalorder %s440_s18, 1  ;;  %p38_p7 = scmp.eq.s32.totalorder %s35_s23, 0 }
   0xd   : > { %p724_p8 = por %p54_p5, %p53_p3  ;;  %p127_p10 = scmp.eq.s32.totalorder %s441_s19, 1 }
   0xe   : > { %p728_p9 = por %p121_p6, %p47_p1  ;;  %p471_p13 = scmp.lt.s32.totalorder %s649_s17, 2 }
   0xf   : > { %s733_s26 = scalar_select %p38_p7, %s637_s14, %s40_s21  }
  0x10   : > { %s866_s25 = scalar_select %p728_p9, 1, 0 }
  0x11   : > { %p735_p11 = por %p127_p10, %p53_p3  ;;  %s153_s28 = sand.u32 1, %s637_s14  }
  0x12   : > { %s444_s29 = sshll.u32 %s153_s28, 3  ;;  %s457_s30 = sshll.u32 %s645_s16, 7 }
  0x13   : > { %s867_s27 = scalar_select %p735_p11, 1, 0 }
  0x14   : > { %s746_s6 = scalar_lea.hbm %s859_s0, %s457_s30  ;;  %s157_s7 = scalar_lea.vmem [#allocation2], %s444_s29 }
  0x15   : > { %s167_s8 = sshll.u32 %s157_s7, 4  ;;  %p752_p0 = pnand %p471_p13, %p718_p4  ;;  %s748_s8 = int_to_ptr.vmem [resolvable:$true] %s167_s8 }
  0x16   : > { %s154_s10 = scalar_lea.sflag [#allocation3], %s153_s28  ;;  %s537_s11 = scalar_lea.hbm %s746_s6, 128 }
  0x17   : > { %p538_p3 = scmp.ne.s32.totalorder %s746_s6, %s537_s11  ;;  %p539_p5 = pneg %p752_p0 }
  0x18   : > { %s542_s21 = scalar_lea.hbm %s859_s0, 256  ;;  %p543_p4 = scmp.lt.u32.totalorder %s746_s6, %s859_s0 }
  0x19   : > { %p540_p6 = pnand %p539_p5, %p538_p3  ;;  %p544_p10 = scmp.lt.u32.totalorder %s542_s21, %s537_s11 }
  0x1a   : > { %p546_p12 = scmp.lt.u32.totalorder %s537_s11, %s746_s6 }
  0x1b   : > { %p541_p7 = pneg %p540_p6  ;;  %p545_p13 = por %p544_p10, %p543_p4 }
  0x1d   : > { %p547_p1 = por %p546_p12, %p545_p13 }
  0x1f   : > { %p548_p2 = pnand %p547_p1, %p541_p7 }
  0x21   : > { %551 = shalt.err (!%p548_p2)
}
  0x22   : > { %s552_s28 = scalar_lea.vmem %s748_s8, 128  ;;  %s651_s29 = smov [#allocation2]  }
  0x23   : > { %p553_p3 = scmp.ne.s32.totalorder %s748_s8, %s552_s28  ;;  %s557_s30 = sshll.u32 %s651_s29, 4  ;;  %s558_s30 = int_to_ptr.vmem [resolvable:$false] %s557_s30 }
  0x24   : > { %s559_s4 = scalar_lea.vmem %s558_s30, 256  ;;  %p560_p9 = scmp.lt.s32.totalorder %s748_s8, %s558_s30 }
  0x25   : > { %p555_p6 = pnand %p553_p3, %p539_p5  ;;  %p561_p4 = scmp.lt.s32.totalorder %s559_s4, %s552_s28 }
  0x27   : > { %p556_p11 = pneg %p555_p6  ;;  %p562_p10 = por %p561_p4, %p560_p9 }
  0x29   : > { %p563_p12 = pnand %p562_p10, %p556_p11 }
  0x2b   : > { %566 = shalt.err (!%p563_p12)
}
  0x2c   : > { %466 = dma.hbm_to_vmem [thread:$0]  (!%p752_p0), %s746_s6, 128, %s748_s8, %s154_s10  }
  0x2d   : > { %p869_p1 = scmp.lt.s32.totalorder %s649_s17, 3  ;;  %p870_p2 = scmp.ge.s32.totalorder %s649_s17, 1 }
  0x2f   : > { %p173_p5 = pnand %p870_p2, %p869_p1 }
  0x30   : > { %s788_s5 = sand.u32 (!%p173_p5), 1, %s633_s13  }
  0x31   : > { %176 = sbr.rel (%p173_p5) target bundleno = 245 (0xf5), region = 32  ;;  %s448_s7 = sshll.u32 (!%p173_p5), %s788_s5, 3 }
  0x32   : > { %s179_s11 = scalar_lea.sflag (!%p173_p5), [#allocation3], %s788_s5  ;;  %s182_s9 = scalar_lea.vmem (!%p173_p5), [#allocation2], %s448_s7 }
  0x38   : > { %620 = dma.done.wait (%p724_p8), %s179_s11, 128  }
  0x39   : > { %622 = vsyncadd (%p724_p8), %s179_s11, 4294967168  ;;  %v652_v0 = vmov 0   ;;  %v653_v1 = vmov 1   ;;  %v208_v2 = vld [vmem:[%s860_s1] sm:$0xf]  ;;  %v654_v4 = vmov 2   ;;  %v216_v6 = vlaneseq }
  0x3a   : > { %525 = vset.pattern.permute.xlu0 %v652_v0  ;;  %526 = vset.pattern.permute.xlu1 %v653_v1  ;;  %v209_v3 = vld [vmem:[%s861_s2] sm:$0xf]  ;;  %v655_v5 = vmov 3   ;;  %s458_s24 = sshll.u32 %s641_s15, 7  ;;  %s204_s19 = scalar_lea.vmem [#allocation5], %s448_s7 }
  0x3b   : > { %212 = vperm.xlu0 %525, %v208_v2   ;;  %244 = vperm.xlu1 %526, %v208_v2   ;;  %v217_v7 = vshrl.u32 %v216_v6, 7  ;;  %v207_v10 = vld [vmem:[%s182_s9] sm:$0xff]  ;;  %s356_s21 = sshll.u32 %s204_s19, 4  ;;  %s810_s28 = scalar_lea.hbm %s862_s3, %s458_s24  ;;  %s812_s21 = int_to_ptr.vmem [resolvable:$true] %s356_s21 }
  0x3c   : > { %s340_s29 = scalar_lea.sflag [#allocation4], %s788_s5  ;;  %s567_s30 = scalar_lea.vmem %s812_s21, 128 }
  0x3d   : > { %v218_v8 = vsub.s32 0, %v217_v7  ;;  %v222_v9 = vsub.s32 4, %v217_v7  ;;  %v249_v11 = vsub.s32 1, %v217_v7  ;;  %v253_v12 = vsub.s32 5, %v217_v7  ;;  %p568_p8 = scmp.ne.s32.totalorder %s812_s21, %s567_s30  ;;  %p871_p9 = scmp.ne.s32.totalorder %s866_s25, 0 }
  0x3e   : > { %v275_v13 = vsub.s32 2, %v217_v7  ;;  %v279_v14 = vsub.s32 6, %v217_v7  ;;  %v301_v21 = vsub.s32 3, %v217_v7  ;;  %v305_v22 = vsub.s32 7, %v217_v7  ;;  %s656_s15 = smov [#allocation5]  }
  0x3f   : > { %238 = vperm.xlu0 %525, %v209_v3   ;;  %527 = vset.pattern.permute.xlu1 %v654_v4  ;;  %v219_v15 = vrot.slane %v207_v10, %v218_v8  ;;  %v223_v16 = vrot.slane %v207_v10, %v222_v9  ;;  %v250_v17 = vrot.slane %v207_v10, %v249_v11  ;;  %p569_p11 = pnand %p568_p8, %p871_p9  ;;  %s571_s4 = sshll.u32 %s656_s15, 4  ;;  %s572_s4 = int_to_ptr.vmem [resolvable:$false] %s571_s4 }
  0x40   : > { %270 = vperm.xlu1 %527, %v208_v2   ;;  %v254_v18 = vrot.slane %v207_v10, %v253_v12  ;;  %v276_v19 = vrot.slane %v207_v10, %v275_v13  ;;  %v280_v20 = vrot.slane %v207_v10, %v279_v14  ;;  %v302_v31 = vrot.slane %v207_v10, %v301_v21  ;;  %s573_s7 = scalar_lea.vmem %s572_s4, 256  ;;  %p574_p7 = scmp.lt.s32.totalorder %s812_s21, %s572_s4 }
  0x41   : > { %v229_v23 = vrot.slane %v219_v15, %v218_v8  ;;  %v233_v24 = vrot.slane %v223_v16, %v218_v8  ;;  %v260_v27 = vrot.slane %v250_v17, %v249_v11  ;;  %v306_v32 = vrot.slane %v207_v10, %v305_v22  ;;  %p570_p0 = pneg %p569_p11  ;;  %p575_p13 = scmp.lt.s32.totalorder %s573_s7, %s567_s30 }
  0x42   : > { %v264_v28 = vrot.slane %v254_v18, %v249_v11  ;;  %v286_v29 = vrot.slane %v276_v19, %v275_v13  ;;  %v290_v30 = vrot.slane %v280_v20, %v275_v13  ;;  %v312_v43 = vrot.slane %v302_v31, %v301_v21 }
  0x43   : > { %528 = vset.pattern.permute.xlu0 %v655_v5  ;;  %v316_v44 = vrot.slane %v306_v32, %v301_v21  ;;  %p576_p3 = por %p575_p13, %p574_p7 }
  0x44   : > { %296 = vperm.xlu0 %528, %v208_v2  }
  0x45   : > { %p577_p6 = pnand %p576_p3, %p570_p0 }
  0xba   : > { %v213_v25 = vpop.permute.xlu0 %212  ;;  %v245_v26 = vpop.permute.xlu1 %244 }
  0xbb   : > { %v234_v33 = vmul.f32 %v229_v23, %v213_v25  ;;  %v235_v34 = vmul.f32 %v233_v24, %v213_v25  ;;  %v265_v36 = vmul.f32 %v260_v27, %v245_v26  ;;  %v266_v37 = vmul.f32 %v264_v28, %v245_v26 }
  0xbe   : > { %v239_v35 = vpop.permute.xlu0 %238 }
  0xbf   : > { %v241_v38 = vadd.f32 %v239_v35, %v234_v33  ;;  %v242_v39 = vadd.f32 %v239_v35, %v235_v34  ;;  %v271_v40 = vpop.permute.xlu1 %270 }
  0xc0   : > { %v291_v41 = vmul.f32 %v286_v29, %v271_v40  ;;  %v292_v42 = vmul.f32 %v290_v30, %v271_v40 }
  0xc1   : > { %v267_v45 = vadd.f32 %v265_v36, %v241_v38  ;;  %v268_v46 = vadd.f32 %v266_v37, %v242_v39 }
  0xc3   : > { %v293_v47 = vadd.f32 %v291_v41, %v267_v45  ;;  %v294_v48 = vadd.f32 %v292_v42, %v268_v46  ;;  %v297_v49 = vpop.permute.xlu0 %296 }
  0xc4   : > { %v317_v50 = vmul.f32 %v312_v43, %v297_v49  ;;  %v318_v51 = vmul.f32 %v316_v44, %v297_v49 }
  0xc6   : > { %v319_v52 = vadd.f32 %v317_v50, %v293_v47  ;;  %v320_v53 = vadd.f32 %v318_v51, %v294_v48 }
  0xc8   : > { %v450_v54 = vmul.f32 -1.442695, %v319_v52  ;;  %v451_v55 = vmul.f32 -1.442695, %v320_v53 }
  0xca   : > { %529 = vpow2.f32 %v450_v54 }
  0xcb   : > { %531 = vpow2.f32 %v451_v55 }
  0xd4   : > { %v530_v56 = vpop.eup %529 }
  0xd5   : > { %v532_v57 = vpop.eup %531  ;;  %v327_v58 = vadd.f32 1.0, %v530_v56 }
  0xd6   : > { %v328_v59 = vadd.f32 1.0, %v532_v57 }
  0xd7   : > { %533 = vrcp.f32 %v327_v58 }
  0xd8   : > { %535 = vrcp.f32 %v328_v59 }
  0xe1   : > { %v534_v60 = vpop.eup %533 }
  0xe2   : > { %v536_v61 = vpop.eup %535 }
  0xe3   : > { %v335_v62 = vcombine.low %v534_v60, %v536_v61 }
  0xe5   : > { %v337_v63 = vmul.f32 %v335_v62, %v207_v10 }
  0xe7   : > { %338 = vst [vmem:[%s204_s19] sm:$0xff] %v337_v63 }
  0xe8   : > { %580 = shalt.err (!%p577_p6)
}
  0xe9   : > { %s581_s5 = scalar_lea.hbm %s810_s28, 128  ;;  %s585_s6 = scalar_lea.hbm %s862_s3, 256 }
  0xea   : > { %p582_p4 = scmp.ne.s32.totalorder %s810_s28, %s581_s5  ;;  %p586_p1 = scmp.lt.u32.totalorder %s810_s28, %s862_s3 }
  0xeb   : > { %p587_p2 = scmp.lt.u32.totalorder %s585_s6, %s581_s5  ;;  %p589_p8 = scmp.lt.u32.totalorder %s581_s5, %s810_s28 }
  0xec   : > { %p583_p10 = pnand %p582_p4, %p871_p9 }
  0xed   : > { %p588_p5 = por %p587_p2, %p586_p1 }
  0xee   : > { %p584_p12 = pneg %p583_p10 }
  0xef   : > { %p590_p11 = por %p589_p8, %p588_p5 }
  0xf1   : > { %p591_p0 = pnand %p590_p11, %p584_p12 }
  0xf3   : > { %594 = shalt.err (!%p591_p0)
}
  0xf4   : > { %461 = dma.vmem_to_hbm [thread:$0]  (%p871_p9), %s812_s21, 128, %s810_s28, %s340_s29  }
  0xf5 PF: > { %s368_s18 = sand.u32 1, %s629_s12   ;;  %p872_p7 = scmp.ne.s32.totalorder %s867_s27, 0 }
  0xf6   : > { %p873_p13 = scmp.ge.s32.totalorder %s649_s17, 2  ;;  %s369_s24 = scalar_lea.sflag [#allocation4], %s368_s18 }
  0xf8   : > { %p468_p3 = pnand %p873_p13, %p872_p7 }
  0xfa   : > { %624 = dma.done.wait (!%p468_p3), %s369_s24, 128  }
  0xfb   : > { %626 = vsyncadd (!%p468_p3), %s369_s24, 4294967168  ;;  %s19_s17 = sadd.s32 1, %s649_s17   ;;  %s874_s12 = smov %s633_s13 }
  0xfc   : > { %p16_p6 = scmp.ge.s32.totalorder %s19_s17, 4   ;;  %s875_s13 = smov %s637_s14 }
  0xfd   : > { %s876_s14 = smov %s733_s26  ;;  %s877_s15 = smov %s645_s16 }
  0xfe   : > { %s878_s16 = smov %s880_s20  ;;  %18 = sbr.rel (!%p16_p6) target bundleno = 6 (0x6), region = 77 }
 0x105   :  { %374 = vsyncpa [#allocation3], 1 }
 0x106   :  { %376 = vsyncpa [#allocation3 + $0x1], 1 }
 0x107   :  { %377 = vsyncpa [#allocation4], 1 }
 0x108   :  { %379 = vsyncpa [#allocation4 + $0x1], 1 }

</bundles_post_ra>
